<compile_context>
chip_gen: v7x
topology: tpu7x:2x2x1
jax: 0.10.0
libtpu: 0.0.40
codegen_flags: <defaults>
</compile_context>

<pallas_src>
import jax
import jax.numpy as jnp
from jax.experimental import pallas as pl
from jax.experimental.pallas import tpu as pltpu

IN_FEATURES = 10
HIDDEN = 10
OUT_FEATURES = 5

_LANE = 128           # TPU vreg lane width
_MAX_B_TILE = 4096    # ~240 KiB HBM traffic / step; amortizes ~0.35 us step overhead


def _toy_mlp_kernel(xt_ref, w1_ref, b1_ref, w2_ref, b2_ref, ot_ref):
    # xt_ref: (IN, Bt)   w1_ref: (HID, IN)   b1_ref: (HID, 1)
    # w2_ref: (OUT, HID) b2_ref: (OUT, 1)    ot_ref: (OUT, Bt)
    xt = xt_ref[...]
    h = jnp.dot(w1_ref[...], xt, preferred_element_type=jnp.float32)   # (HID, Bt)
    h = jnp.maximum(h + b1_ref[...], 0.0)                              # bias bcast + ReLU
    o = jnp.dot(w2_ref[...], h, preferred_element_type=jnp.float32)    # (OUT, Bt)
    ot_ref[...] = (o + b2_ref[...]).astype(ot_ref.dtype)


@jax.jit
def toy_model_forward(x, w1, b1, w2, b2):
    """x: (B, 10) f32. w1: (10, 10), b1: (10,), w2: (5, 10), b2: (5,)  (PyTorch layout)."""
    B = x.shape[0]

    # Lane-dense batch padding + tile choice (all static at trace time).
    b_lane = ((B + _LANE - 1) // _LANE) * _LANE
    b_tile = min(_MAX_B_TILE, b_lane)
    b_pad = ((b_lane + b_tile - 1) // b_tile) * b_tile
    grid = (b_pad // b_tile,)

    # Wrapper-side layout plumbing: pad batch, put batch on the lane axis.
    # pad + transpose fuse into a single XLA copy producing (IN, B_pad).
    xt = jnp.pad(x, ((0, b_pad - B), (0, 0))).T
    b1c = b1.reshape(HIDDEN, 1)
    b2c = b2.reshape(OUT_FEATURES, 1)

    ot = pl.pallas_call(
        _toy_mlp_kernel,
        out_shape=jax.ShapeDtypeStruct((OUT_FEATURES, b_pad), x.dtype),
        grid_spec=pltpu.PrefetchScalarGridSpec(
            num_scalar_prefetch=0,
            grid=grid,
            in_specs=[
                pl.BlockSpec((IN_FEATURES, b_tile), lambda i: (0, i)),   # x^T tile
                pl.BlockSpec((HIDDEN, IN_FEATURES), lambda i: (0, 0)),   # W1 (resident)
                pl.BlockSpec((HIDDEN, 1), lambda i: (0, 0)),             # b1 (resident)
                pl.BlockSpec((OUT_FEATURES, HIDDEN), lambda i: (0, 0)),  # W2 (resident)
                pl.BlockSpec((OUT_FEATURES, 1), lambda i: (0, 0)),       # b2 (resident)
            ],
            out_specs=pl.BlockSpec((OUT_FEATURES, b_tile), lambda i: (0, i)),
        ),
        compiler_params=pltpu.CompilerParams(
            dimension_semantics=("parallel",),   # megacore sharding on v7x
        ),
    )(xt, w1, b1c, w2, b2c)

    # Slice the live batch first, then transpose back to (B, 5).
    return ot[:, :B].T


def init_params(key):
    """Deterministic init mirroring nn.Linear's U(-1/sqrt(fan_in), 1/sqrt(fan_in)).

    Weights kept in the PyTorch (out_features, in_features) layout.
    """
    k1, k2, k3, k4 = jax.random.split(key, 4)
    bound1 = 1.0 / jnp.sqrt(jnp.float32(IN_FEATURES))
    bound2 = 1.0 / jnp.sqrt(jnp.float32(HIDDEN))
    w1 = jax.random.uniform(k1, (HIDDEN, IN_FEATURES), jnp.float32,
                            minval=-bound1, maxval=bound1)
    b1 = jax.random.uniform(k2, (HIDDEN,), jnp.float32,
                            minval=-bound1, maxval=bound1)
    w2 = jax.random.uniform(k3, (OUT_FEATURES, HIDDEN), jnp.float32,
                            minval=-bound2, maxval=bound2)
    b2 = jax.random.uniform(k4, (OUT_FEATURES,), jnp.float32,
                            minval=-bound2, maxval=bound2)
    return w1, b1, w2, b2


def reference_forward(x, w1, b1, w2, b2):
    h = jnp.maximum(x @ w1.T + b1, 0.0)
    return h @ w2.T + b2


if __name__ == "__main__":
    key = jax.random.PRNGKey(0)
    k_x, k_x2, k_x3, k_p = jax.random.split(key, 4)
    w1, b1, w2, b2 = init_params(k_p)

    # Small-batch check (matches the ToyModel usage shape: (B, 10)).
    B = 8
    x = jax.random.normal(k_x, (B, IN_FEATURES), jnp.float32)
    out = jax.block_until_ready(toy_model_forward(x, w1, b1, w2, b2))
    ref = reference_forward(x, w1, b1, w2, b2)
    assert out.shape == (B, OUT_FEATURES), out.shape
    assert jnp.allclose(out, ref, atol=1e-5, rtol=1e-5), "mismatch vs reference (B=8)"

    # Non-multiple batch: exercises the batch padding path (single tile).
    B2 = 1153
    x2 = jax.random.normal(k_x2, (B2, IN_FEATURES), jnp.float32)
    out2 = jax.block_until_ready(toy_model_forward(x2, w1, b1, w2, b2))
    ref2 = reference_forward(x2, w1, b1, w2, b2)
    assert out2.shape == (B2, OUT_FEATURES), out2.shape
    assert jnp.allclose(out2, ref2, atol=1e-4, rtol=1e-4), "mismatch vs reference (B=1153)"

    # Large batch: exercises the multi-step grid (pipelined, megacore-shardable).
    B3 = 9000
    x3 = jax.random.normal(k_x3, (B3, IN_FEATURES), jnp.float32)
    out3 = jax.block_until_ready(toy_model_forward(x3, w1, b1, w2, b2))
    ref3 = reference_forward(x3, w1, b1, w2, b2)
    assert out3.shape == (B3, OUT_FEATURES), out3.shape
    assert jnp.allclose(out3, ref3, atol=1e-4, rtol=1e-4), "mismatch vs reference (B=9000)"

    print("KERNEL_OK")
</pallas_src>

<mosaic_0001>
module attributes {stable_mosaic.version = 11 : i64} {
  func.func @_toy_mlp_kernel(%arg0: i32, %arg1: memref<10x128xf32, #tpu.memory_space<vmem>>, %arg2: memref<10x10xf32, #tpu.memory_space<vmem>>, %arg3: memref<10x1xf32, #tpu.memory_space<vmem>>, %arg4: memref<5x10xf32, #tpu.memory_space<vmem>>, %arg5: memref<5x1xf32, #tpu.memory_space<vmem>>, %arg6: memref<5x128xf32, #tpu.memory_space<vmem>>) attributes {dimension_semantics = [#tpu.dimension_semantics<parallel>], iteration_bounds = array<i64: 1>, scalar_prefetch = 0 : i64, scratch_operands = 0 : i64, tpu.core_type = #tpu.core_type<tc>, window_params = [{transform_indices = @transform_0, window_bounds = array<i64: 10, 128>}, {pipeline_mode = #tpu.pipeline_mode<synchronous>, transform_indices = @transform_1, window_bounds = array<i64: 10, 10>}, {pipeline_mode = #tpu.pipeline_mode<synchronous>, transform_indices = @transform_2, window_bounds = array<i64: 10, 1>}, {pipeline_mode = #tpu.pipeline_mode<synchronous>, transform_indices = @transform_3, window_bounds = array<i64: 5, 10>}, {pipeline_mode = #tpu.pipeline_mode<synchronous>, transform_indices = @transform_4, window_bounds = array<i64: 5, 1>}, {transform_indices = @transform_5, window_bounds = array<i64: 5, 128>}]} {
    %c0 = arith.constant 0 : index
    %c0_0 = arith.constant 0 : index
    %0 = vector.load %arg1[%c0, %c0_0] : memref<10x128xf32, #tpu.memory_space<vmem>>, vector<10x128xf32>
    %c0_1 = arith.constant 0 : index
    %c0_2 = arith.constant 0 : index
    %1 = vector.load %arg2[%c0_1, %c0_2] : memref<10x10xf32, #tpu.memory_space<vmem>>, vector<10x10xf32>
    %cst = arith.constant dense<0.000000e+00> : vector<10x128xf32>
    %2 = tpu.matmul %1, %0, %cst {dimension_numbers = #tpu.dot_dimension_numbers<[1], [0], [0], [1], [0, 0, 1, 1], [], []>} : vector<10x10xf32>, vector<10x128xf32>, vector<10x128xf32> -> vector<10x128xf32>
    %c0_3 = arith.constant 0 : index
    %c0_4 = arith.constant 0 : index
    %3 = vector.load %arg3[%c0_3, %c0_4] : memref<10x1xf32, #tpu.memory_space<vmem>>, vector<10x1xf32>
    %4 = vector.broadcast %3 : vector<10x1xf32> to vector<10x128xf32>
    %5 = arith.addf %2, %4 : vector<10x128xf32>
    %cst_5 = arith.constant 0.000000e+00 : f32
    %6 = vector.broadcast %cst_5 : f32 to vector<10x128xf32>
    %7 = arith.maximumf %5, %6 : vector<10x128xf32>
    %c0_6 = arith.constant 0 : index
    %c0_7 = arith.constant 0 : index
    %8 = vector.load %arg4[%c0_6, %c0_7] : memref<5x10xf32, #tpu.memory_space<vmem>>, vector<5x10xf32>
    %cst_8 = arith.constant dense<0.000000e+00> : vector<5x128xf32>
    %9 = tpu.matmul %8, %7, %cst_8 {dimension_numbers = #tpu.dot_dimension_numbers<[1], [0], [0], [1], [0, 0, 1, 1], [], []>} : vector<5x10xf32>, vector<10x128xf32>, vector<5x128xf32> -> vector<5x128xf32>
    %c0_9 = arith.constant 0 : index
    %c0_10 = arith.constant 0 : index
    %10 = vector.load %arg5[%c0_9, %c0_10] : memref<5x1xf32, #tpu.memory_space<vmem>>, vector<5x1xf32>
    %11 = vector.broadcast %10 : vector<5x1xf32> to vector<5x128xf32>
    %12 = arith.addf %9, %11 : vector<5x128xf32>
    %c0_11 = arith.constant 0 : index
    %c0_12 = arith.constant 0 : index
    %13 = vector.load %arg6[%c0_11, %c0_12] : memref<5x128xf32, #tpu.memory_space<vmem>>, vector<5x128xf32>
    tpu.vector_store %arg6[%c0_11, %c0_12], %12 {strides = array<i32>} : memref<5x128xf32, #tpu.memory_space<vmem>>, vector<5x128xf32>,
    return
  }
  func.func @transform_0(%arg0: i32) -> (i32, i32) {
    %c0_i32 = arith.constant 0 : i32
    %c0_i32_0 = arith.constant 0 : i32
    return %c0_i32, %arg0 : i32, i32
  }
  func.func @transform_1(%arg0: i32) -> (i32, i32) {
    %c0_i32 = arith.constant 0 : i32
    %c0_i32_0 = arith.constant 0 : i32
    %c0_i32_1 = arith.constant 0 : i32
    return %c0_i32, %c0_i32_0 : i32, i32
  }
  func.func @transform_2(%arg0: i32) -> (i32, i32) {
    %c0_i32 = arith.constant 0 : i32
    %c0_i32_0 = arith.constant 0 : i32
    %c0_i32_1 = arith.constant 0 : i32
    return %c0_i32, %c0_i32_0 : i32, i32
  }
  func.func @transform_3(%arg0: i32) -> (i32, i32) {
    %c0_i32 = arith.constant 0 : i32
    %c0_i32_0 = arith.constant 0 : i32
    %c0_i32_1 = arith.constant 0 : i32
    return %c0_i32, %c0_i32_0 : i32, i32
  }
  func.func @transform_4(%arg0: i32) -> (i32, i32) {
    %c0_i32 = arith.constant 0 : i32
    %c0_i32_0 = arith.constant 0 : i32
    %c0_i32_1 = arith.constant 0 : i32
    return %c0_i32, %c0_i32_0 : i32, i32
  }
  func.func @transform_5(%arg0: i32) -> (i32, i32) {
    %c0_i32 = arith.constant 0 : i32
    %c0_i32_0 = arith.constant 0 : i32
    return %c0_i32, %arg0 : i32, i32
  }
}

</mosaic_0001>

<bundles_post_ra>
// kernel: toy_model_forward.1
= control target key start
LH: loop header
LB: loop body
LE: loop exit
PB: predicated region body
PF: predicated region fallthrough
CT: control target
= control target key end

     0   :  { %vm43_vm0 = vcmask 1041408   ;;  %vm36_vm1 = vcmask 80896   ;;  %vm255_vm2 = vmmov 1   ;;  %v256_v3 = vmov 0   ;;  %s330_s0 = inlined_call_operand.vmem [shape: f32[10,128], index: 0, kind: input, shape index: {}]   ;;  %s331_s1 = inlined_call_operand.vmem [shape: f32[10,10], index: 1, kind: input, shape index: {}]   ;;  %s332_s2 = inlined_call_operand.vmem [shape: f32[10,1], index: 2, kind: input, shape index: {}]   ;;  %s333_s4 = inlined_call_operand.vmem [shape: f32[5,1], index: 4, kind: input, shape index: {}]   ;;  %s334_s3 = inlined_call_operand.vmem [shape: f32[5,10], index: 3, kind: input, shape index: {}]   ;;  %s335_s5 = inlined_call_operand.vmem [shape: f32[5,128], index: 5, kind: output, shape index: {}]  }
   0x1   :  { %v20_v0 = vld [vmem:[%s330_s0] sm:$0xff]  ;;  %v21_v1 = vld [vmem:[%s330_s0 + $0x8] sm:$0x3]  ;;  %vm296_vm3 = vmpackc.low %vm43_vm0, %vm255_vm2  ;;  %253 = vset.pattern.permute.xlu0 %v256_v3  ;;  %254 = vset.pattern.permute.xlu1 %v256_v3  ;;  %v257_v9 = vmov 0.0|0.0   ;;  %vm258_vm4 = vmmov 0   ;;  %v259_v10 = vmov 0.0  }
   0x2   :  { %v238_v4 = vpack.c.bf16 %v21_v1, %v20_v0  ;;  %v22_v5 = vld [vmem:[%s331_s1] sm:$0xff]  ;;  %v25_v7 = vld [vmem:[%s332_s2 + $0x8] sm:$0x3]  ;;  %244 = vmatprep.subr.bf16.mxu1 %v257_v9  ;;  %235 = vmatprep.mubr.msk.f32.mxu1 %vm258_vm4, %v259_v10 }
   0x3   :  { %v24_v6 = vld [vmem:[%s332_s2] sm:$0xff]  ;;  %228 = vmatprep.mubr.msk.f32.mxu0 %vm36_vm1, %v22_v5  ;;  %v23_v8 = vld [vmem:[%s331_s1 + $0x8] sm:$0x3] }
   0x4   :  { %28 = vperm.xlu0 %253, %v24_v6   ;;  %240 = vmatprep.subr.msk.bf16.mxu0 %vm296_vm3, %v238_v4  ;;  %v125_v11 = vld [vmem:[%s333_s4] sm:$0x1f] }
   0x5   :  { %243 = vmatpush3.bf16.msk.msra.mxu0 %vm296_vm3, %v238_v4  ;;  %128 = vperm.xlu1 %254, %v125_v11   ;;  %v124_v21 = vld [vmem:[%s334_s3] sm:$0x1f] }
   0x8   :  { %33 = vperm.xlu0 %253, %v25_v7   ;;  %229 = vmatmul.mubr.msk.f32.vlgmr.msra.gmra.mrb[0].mxu0 %vm36_vm1, %v23_v8 }
  0x83   :  { %v29_v12 = vpop.permute.xlu0 %28 }
  0x84   :  { %v129_v22 = vpop.permute.xlu1 %128 }
  0x87   :  { %v34_v13 = vpop.permute.xlu0 %33 }
  0xdb   :  { %v230_v14 = vpop.f32.mrb[0].mxu0 }
  0xdc   :  { %v119_v15 = vadd.f32 %v230_v14, %v34_v13  ;;  %v113_v16 = vpop.f32.mrb[1].mxu0 }
  0xdd   :  { %v114_v17 = vadd.f32 %v113_v16, %v29_v12 }
  0xde   :  { %v123_v18 = vmax.f32 %v119_v15, 0.0 }
  0xdf   :  { %v122_v19 = vmax.f32 %v114_v17, 0.0 }
  0xe1   :  { %v245_v20 = vpack.c.bf16 %v123_v18, %v122_v19 }
  0xe3   :  { %247 = vmatpush3.bf16.msk.msra.mxu1 %vm296_vm3, %v245_v20 }
  0xe6   :  { %236 = vmatmul.mubr.msk.f32.vlgmr.msra.gmra.mrb[0].mxu1 %vm36_vm1, %v124_v21 }
 0x1b9   :  { %v203_v23 = vpop.f32.mrb[0].mxu1 }
 0x1ba   :  { %v204_v24 = vadd.f32 %v203_v23, %v129_v22  ;;  %v237_v25 = vpop.f32.mrb[1].mxu1 }
 0x1bc   :  { %207 = vst [vmem:[%s335_s5] sm:$0x1f] %v204_v24 }

</bundles_post_ra>
